<compile_context>
chip_gen: v7x
topology: tpu7x:2x2x1
jax: 0.10.0
libtpu: 0.0.40
codegen_flags: <defaults>
</compile_context>

<pallas_src>
import functools

import numpy as np
import jax
import jax.numpy as jnp
from jax.experimental import pallas as pl
from jax.experimental.pallas import tpu as pltpu

TILE_M = 512  # ~0.35us fixed cost per grid step; a (512, K<=147) bf16 tile is tiny vs VMEM


def _round_up(x, m):
    return ((x + m - 1) // m) * m


# ----------------------------------------------------------------------------
# Pallas kernels
# ----------------------------------------------------------------------------
def _linear_kernel(x_ref, w_ref, b_ref, o_ref, *, activation):
    """One M-tile of a dense layer: out = act(x @ w + b). bf16 in, f32 accum."""
    acc = jnp.dot(x_ref[...], w_ref[...], preferred_element_type=jnp.float32)
    acc = acc + b_ref[...]
    if activation == "relu":
        acc = jnp.maximum(acc, 0.0)
    elif activation == "tanh":
        acc = jnp.tanh(acc)
    o_ref[...] = acc.astype(o_ref.dtype)


def pallas_linear(x, w, b, activation=None, tile_m=TILE_M):
    """x: (M, K), w: (K, N), b: (N,) -> (M, N) f32. Tiled over M, no pad/unpad."""
    M, K = x.shape
    N = w.shape[1]
    tm = min(tile_m, _round_up(M, 8))
    grid = (pl.cdiv(M, tm),)
    return pl.pallas_call(
        functools.partial(_linear_kernel, activation=activation),
        out_shape=jax.ShapeDtypeStruct((M, N), jnp.float32),
        grid=grid,
        in_specs=[
            pl.BlockSpec((tm, K), lambda i: (i, 0)),
            pl.BlockSpec((K, N), lambda i: (0, 0)),
            pl.BlockSpec((1, N), lambda i: (0, 0)),
        ],
        out_specs=pl.BlockSpec((tm, N), lambda i: (i, 0)),
        compiler_params=pltpu.CompilerParams(dimension_semantics=("parallel",)),
    )(x.astype(jnp.bfloat16), w.astype(jnp.bfloat16),
      b.reshape(1, N).astype(jnp.float32))


def _conv_vox_kernel(x_ref, w2_ref, b2_ref, wv_ref, bv_ref, f2_ref, vox_ref):
    """Fused conv2 (im2col matmul + ReLU) and voxel-head 1x1 conv on the same tile."""
    y = jnp.dot(x_ref[...], w2_ref[...], preferred_element_type=jnp.float32)
    y = jnp.maximum(y + b2_ref[...], 0.0)
    f2_ref[...] = y.astype(f2_ref.dtype)
    v = jnp.dot(y.astype(jnp.bfloat16), wv_ref[...],
                preferred_element_type=jnp.float32)
    vox_ref[...] = (v + bv_ref[...]).astype(vox_ref.dtype)


def pallas_conv2_and_voxel(x, w2, b2, wv, bv, tile_m=TILE_M):
    """x: (M, K) im2col rows of f1. Returns (f2 (M, C2), vox (M, D))."""
    M, K = x.shape
    C2 = w2.shape[1]
    D = wv.shape[1]
    tm = min(tile_m, _round_up(M, 8))
    grid = (pl.cdiv(M, tm),)
    return pl.pallas_call(
        _conv_vox_kernel,
        out_shape=(jax.ShapeDtypeStruct((M, C2), jnp.float32),
                   jax.ShapeDtypeStruct((M, D), jnp.float32)),
        grid=grid,
        in_specs=[
            pl.BlockSpec((tm, K), lambda i: (i, 0)),
            pl.BlockSpec((K, C2), lambda i: (0, 0)),
            pl.BlockSpec((1, C2), lambda i: (0, 0)),
            pl.BlockSpec((C2, D), lambda i: (0, 0)),
            pl.BlockSpec((1, D), lambda i: (0, 0)),
        ],
        out_specs=(pl.BlockSpec((tm, C2), lambda i: (i, 0)),
                   pl.BlockSpec((tm, D), lambda i: (i, 0))),
        compiler_params=pltpu.CompilerParams(dimension_semantics=("parallel",)),
    )(x.astype(jnp.bfloat16), w2.astype(jnp.bfloat16),
      b2.reshape(1, C2).astype(jnp.float32),
      wv.astype(jnp.bfloat16), bv.reshape(1, D).astype(jnp.float32))


def _stats_fusion_kernel(f_ref, max_ref, mean_ref, std_ref):
    """extract_feature_stats on a lane-dense (B, V, N*C) slab, single pass over views.

    Matches torch.max / torch.mean / torch.var(unbiased=False) over the view dim,
    std = sqrt(var + 1e-8).
    """
    num_views = f_ref.shape[1]
    f0 = f_ref[:, 0, :]
    mx = f0
    s = f0
    ss = f0 * f0
    for v in range(1, num_views):            # static unroll over views (V is small)
        fv = f_ref[:, v, :]
        mx = jnp.maximum(mx, fv)
        s = s + fv
        ss = ss + fv * fv
    inv_v = 1.0 / num_views
    mean = s * inv_v
    var = jnp.maximum(ss * inv_v - mean * mean, 0.0)   # biased variance, one pass
    max_ref[...] = mx
    mean_ref[...] = mean
    std_ref[...] = jnp.sqrt(var + 1e-8)


def pallas_stats_fusion(features):
    """features: (B, V, N, C) -> (stats (B, N, 3C), weights (B, N, V, 1))."""
    B, V, N, C = features.shape
    NC = N * C
    f = features.reshape(B, V, NC).astype(jnp.float32)   # lane dim = N*C (lane-dense)
    out_sds = jax.ShapeDtypeStruct((B, NC), jnp.float32)
    mx, mean, std = pl.pallas_call(
        _stats_fusion_kernel,
        out_shape=(out_sds, out_sds, out_sds),
        grid=(1,),                                       # whole tensor fits one step
        in_specs=[pl.BlockSpec((B, V, NC), lambda i: (0, 0, 0))],
        out_specs=(pl.BlockSpec((B, NC), lambda i: (0, 0)),
                   pl.BlockSpec((B, NC), lambda i: (0, 0)),
                   pl.BlockSpec((B, NC), lambda i: (0, 0))),
    )(f)
    stats = jnp.concatenate(
        [mx.reshape(B, N, C), mean.reshape(B, N, C), std.reshape(B, N, C)], axis=-1)
    weights = jnp.full((B, N, V, 1), 1.0 / V, jnp.float32)   # constant 1/V, wrapper-side
    return stats, weights


# ----------------------------------------------------------------------------
# JAX glue (reshapes, projection, parameter setup)
# ----------------------------------------------------------------------------
def get_blender_intrinsic_matrix():
    K = [
        [2.1875, 0.0, 0.0, 0.0],
        [0.0, 2.1875, 0.0, 0.0],
        [0.0, 0.0, -1.002002, -0.2002002],
        [0.0, 0.0, -1.0, 0.0],
    ]
    return jnp.array(K, dtype=jnp.float32)


def _conv_patches_nhwc(x_nhwc):
    """3x3 stride-2 SAME im2col in NHWC, bf16 to halve patch HBM traffic.

    # TODO(synk): at real image sizes the im2col expansion should be fused into the
    # Pallas kernel via overlapping input blocks; kept as glue at these small shapes.
    """
    return jax.lax.conv_general_dilated_patches(
        x_nhwc.astype(jnp.bfloat16),
        filter_shape=(3, 3),
        window_strides=(2, 2),
        padding="SAME",
        dimension_numbers=("NHWC", "HWIO", "NHWC"),
    )  # (N, Ho, Wo, Cin*9)


def conv3x3_s2_relu(x_nhwc, w, b):
    """3x3 conv, stride 2, SAME, ReLU. NHWC in -> NHWC out (no transposes)."""
    p = _conv_patches_nhwc(x_nhwc)
    Np, Ho, Wo, CK = p.shape
    out = pallas_linear(p.reshape(-1, CK), w, b, activation="relu")
    return out.reshape(Np, Ho, Wo, w.shape[1])


def conv2_and_voxel_head(x_nhwc, w2, b2, wv, bv):
    """Fused second backbone conv + voxel head 1x1 conv. NHWC in/out."""
    p = _conv_patches_nhwc(x_nhwc)
    Np, Ho, Wo, CK = p.shape
    f2, vox = pallas_conv2_and_voxel(p.reshape(-1, CK), w2, b2, wv, bv)
    return (f2.reshape(Np, Ho, Wo, w2.shape[1]),
            vox.reshape(Np, Ho, Wo, wv.shape[1]))


def project_verts(verts, P):
    """verts: (B, Nv, 3), P: (B, 4, 4) -> NDC xy (B, Nv, 2)."""
    ones = jnp.ones(verts.shape[:-1] + (1,), verts.dtype)
    vh = jnp.concatenate([verts, ones], axis=-1)
    proj = jnp.einsum("bij,bnj->bni", P, vh)
    w = proj[..., 3:4]
    w = jnp.where(jnp.abs(w) < 1e-6, jnp.full_like(w, 1e-6), w)
    return proj[..., :2] / w


def sample_features_nearest(feat_nhwc, ndc):
    """feat: (B, H, W, C), ndc: (B, Nv, 2) in [-1,1] -> (B, Nv, C).

    # TODO(synk): real vert_align uses bilinear grid_sample; data-dependent gather
    # has no clean Pallas tile form, so nearest-neighbor sampling is JAX glue here.
    """
    B, H, W, C = feat_nhwc.shape
    x = jnp.clip((ndc[..., 0] + 1.0) * 0.5 * (W - 1), 0, W - 1)
    y = jnp.clip((ndc[..., 1] + 1.0) * 0.5 * (H - 1), 0, H - 1)
    xi = jnp.round(x).astype(jnp.int32)
    yi = jnp.round(y).astype(jnp.int32)

    def gather_one(f, yi1, xi1):
        return f[yi1, xi1]  # (Nv, C)

    return jax.vmap(gather_one)(feat_nhwc, yi, xi)


# ----------------------------------------------------------------------------
# Model
# ----------------------------------------------------------------------------
class VoxMeshMultiViewHeadPallas:
    """Pallas re-implementation of VoxMeshMultiViewHead forward.

    Config (synthetic, small): stats feature fusion, single-view voxel prediction,
    2-stage backbone with feat_dims = [16, 32], voxel depth = 8.
    """

    def __init__(self, key, num_verts=64, voxel_depth=8):
        self.K = get_blender_intrinsic_matrix()
        self.single_view_voxel_prediction = True

        k1, k2, k3, k4 = jax.random.split(key, 4)
        c1, c2 = 16, 32
        self.feat_dims = (c1, c2)
        # backbone conv weights (im2col layout: (Cin*9, Cout))
        self.w1 = 0.1 * jax.random.normal(k1, (3 * 9, c1), jnp.float32)
        self.b1 = jnp.zeros((c1,), jnp.float32)
        self.w2 = 0.1 * jax.random.normal(k2, (c1 * 9, c2), jnp.float32)
        self.b2 = jnp.zeros((c2,), jnp.float32)
        # voxel head (1x1 conv -> voxel_depth occupancy logits)
        self.wv = 0.1 * jax.random.normal(k3, (c2, voxel_depth), jnp.float32)
        self.bv = jnp.zeros((voxel_depth,), jnp.float32)
        # mesh refinement stage: per-vertex MLP (3*C_sum + 3 -> 3 offsets)
        c_sum = c1 + c2
        self.wr = 0.1 * jax.random.normal(k4, (3 * c_sum + 3, 3), jnp.float32)
        self.br = jnp.zeros((3,), jnp.float32)

        # deterministic "init mesh" vertices: 4x4x4 grid cube centered at (0,0,-1)
        lin = np.linspace(-0.5, 0.5, 4, dtype=np.float32)
        gx, gy, gz = np.meshgrid(lin, lin, lin, indexing="ij")
        verts = np.stack([gx, gy, gz - 1.0], axis=-1).reshape(-1, 3)
        self.dummy_verts = jnp.asarray(verts[:num_verts])

    # --------------------------------------------------------------
    def forward(self, imgs, intrinsics, extrinsics, voxel_only=False):
        """imgs: (B, V, 3, H, W); intrinsics/extrinsics: (B, V, 4, 4)."""
        del intrinsics  # the reference module uses its registered K buffer
        B, V = imgs.shape[0], imgs.shape[1]

        # Flatten views; one NCHW->NHWC transpose on the raw images only.
        flat = imgs.reshape((-1,) + imgs.shape[2:])                 # (B*V, 3, H, W)
        flat_nhwc = jnp.transpose(flat, (0, 2, 3, 1))               # (B*V, H, W, 3)

        # Backbone (NHWC) + fused voxel head on the coarsest feature map.
        f1 = conv3x3_s2_relu(flat_nhwc, self.w1, self.b1)           # (B*V, H/2, W/2, 16)
        f2, vox = conv2_and_voxel_head(f1, self.w2, self.b2, self.wv, self.bv)
        BV, Hf, Wf, _ = f2.shape
        D = vox.shape[-1]
        # tiny transpose to the reference NCHW voxel layout
        voxel_scores = vox.reshape(B, V, Hf, Wf, D).transpose(0, 1, 4, 2, 3)

        img_feats = [f.reshape(B, V, *f.shape[1:]) for f in (f1, f2)]   # NHWC per view

        # get_merged_voxel_scores (single-view branch)
        merged_voxel_scores = voxel_scores[:, 0]
        transformed_voxel_scores = merged_voxel_scores
        voxel_scores_list = [voxel_scores[:, 0]]
        # TODO(synk): multi-view voxel merging (merge_multi_view_voxels, trilinear
        # resampling of voxel grids) has no clean Pallas equivalent; single-view path used.

        # process_extrinsics: rel = T_v @ inv(T_0), P_v = K @ rel  (tiny 4x4 algebra, glue)
        Kmat = jnp.broadcast_to(self.K[None], (B, 4, 4))
        ref_inv = jnp.linalg.inv(extrinsics[:, 0])
        rel_extrinsics = jnp.einsum("bvij,bjk->bvik", extrinsics, ref_inv)
        P = [jnp.matmul(Kmat, rel_extrinsics[:, v]) for v in range(V)]

        # TODO(synk): pytorch3d cubify() (voxel -> mesh extraction) has no Pallas
        # equivalent; a deterministic cube-grid "init mesh" is used instead.
        verts = jnp.broadcast_to(self.dummy_verts[None], (B,) + self.dummy_verts.shape)

        # vert_align per view, concat feature pyramid levels along channels
        per_view = []
        for v in range(V):
            ndc = project_verts(verts, P[v])
            feats_v = [
                sample_features_nearest(img_feats[l][:, v], ndc)
                for l in range(len(img_feats))
            ]
            per_view.append(jnp.concatenate(feats_v, axis=-1))      # (B, Nv, C_sum)
        mv_feats = jnp.stack(per_view, axis=1)                       # (B, V, Nv, C_sum)

        # fuse_multiview_features with 'stats' fusion -> Pallas reduction kernel
        fused, view_weights = pallas_stats_fusion(mv_feats)          # (B,Nv,3C), (B,Nv,V,1)

        # mesh refinement stage: per-vertex MLP predicting tanh offsets
        # TODO(synk): GraphConv over mesh edges omitted (requires pytorch3d mesh
        # connectivity from cubify); refinement approximated as per-vertex MLP.
        refine_in = jnp.concatenate([fused, verts], axis=-1)         # (B, Nv, 3C+3)
        Din = refine_in.shape[-1]
        off = pallas_linear(refine_in.reshape(-1, Din), self.wr, self.br,
                            activation="tanh")
        refined_verts = verts + off.reshape(B, -1, 3)

        return {
            "voxel_scores": voxel_scores_list,
            "meshes_pred": refined_verts,
            "merged_voxel_scores": merged_voxel_scores,
            "transformed_voxel_scores": transformed_voxel_scores,
            "view_weights": view_weights,
            "init_meshes": verts,
        }


# ----------------------------------------------------------------------------
def make_extrinsics(B, V):
    mats = np.zeros((B, V, 4, 4), np.float32)
    for b in range(B):
        for v in range(V):
            ang = 0.2 * v + 0.05 * b
            c, s = np.cos(ang), np.sin(ang)
            mats[b, v] = np.array(
                [[c, 0.0, s, 0.0],
                 [0.0, 1.0, 0.0, 0.0],
                 [-s, 0.0, c, 0.1 * v],
                 [0.0, 0.0, 0.0, 1.0]], np.float32)
    return jnp.asarray(mats)


if __name__ == "__main__":
    key = jax.random.PRNGKey(0)
    k_img, k_param = jax.random.split(key)

    B, V, H, W = 2, 3, 16, 16
    imgs = jax.random.normal(k_img, (B, V, 3, H, W), jnp.float32)
    extrinsics = make_extrinsics(B, V)
    intrinsics = jnp.broadcast_to(get_blender_intrinsic_matrix()[None, None],
                                  (B, V, 4, 4))

    model = VoxMeshMultiViewHeadPallas(k_param)
    out = model.forward(imgs, intrinsics, extrinsics)
    out = jax.block_until_ready(out)

    # light sanity checks on shapes
    assert out["meshes_pred"].shape == (B, 64, 3)
    assert out["view_weights"].shape == (B, 64, V, 1)
    assert out["merged_voxel_scores"].shape == (B, 8, 4, 4)
    assert out["voxel_scores"][0].shape == (B, 8, 4, 4)
    assert jnp.all(jnp.isfinite(out["meshes_pred"]))
    print("KERNEL_OK")
</pallas_src>

<mosaic_0001>
module attributes {stable_mosaic.version = 11 : i64} {
  func.func @_linear_kernel(%arg0: i32, %arg1: memref<384x27xbf16, #tpu.memory_space<vmem>>, %arg2: memref<27x16xbf16, #tpu.memory_space<vmem>>, %arg3: memref<1x16xf32, #tpu.memory_space<vmem>>, %arg4: memref<384x16xf32, #tpu.memory_space<vmem>>) attributes {dimension_semantics = [#tpu.dimension_semantics<parallel>], iteration_bounds = array<i64: 1>, scalar_prefetch = 0 : i64, scratch_operands = 0 : i64, tpu.core_type = #tpu.core_type<tc>, window_params = [{transform_indices = @transform_0, window_bounds = array<i64: 384, 27>}, {pipeline_mode = #tpu.pipeline_mode<synchronous>, transform_indices = @transform_1, window_bounds = array<i64: 27, 16>}, {pipeline_mode = #tpu.pipeline_mode<synchronous>, transform_indices = @transform_2, window_bounds = array<i64: 1, 16>}, {transform_indices = @transform_3, window_bounds = array<i64: 384, 16>}]} {
    %c0 = arith.constant 0 : index
    %c0_0 = arith.constant 0 : index
    %0 = vector.load %arg1[%c0, %c0_0] : memref<384x27xbf16, #tpu.memory_space<vmem>>, vector<384x27xbf16>
    %c0_1 = arith.constant 0 : index
    %c0_2 = arith.constant 0 : index
    %1 = vector.load %arg2[%c0_1, %c0_2] : memref<27x16xbf16, #tpu.memory_space<vmem>>, vector<27x16xbf16>
    %cst = arith.constant dense<0.000000e+00> : vector<384x16xf32>
    %2 = tpu.matmul %0, %1, %cst {dimension_numbers = #tpu.dot_dimension_numbers<[1], [0], [0], [1], [0, 0, 1, 1], [], []>} : vector<384x27xbf16>, vector<27x16xbf16>, vector<384x16xf32> -> vector<384x16xf32>
    %c0_3 = arith.constant 0 : index
    %c0_4 = arith.constant 0 : index
    %3 = vector.load %arg3[%c0_3, %c0_4] : memref<1x16xf32, #tpu.memory_space<vmem>>, vector<1x16xf32>
    %4 = vector.broadcast %3 : vector<1x16xf32> to vector<384x16xf32>
    %5 = arith.addf %2, %4 : vector<384x16xf32>
    %cst_5 = arith.constant 0.000000e+00 : f32
    %6 = vector.broadcast %cst_5 : f32 to vector<384x16xf32>
    %7 = arith.maximumf %5, %6 : vector<384x16xf32>
    %c0_6 = arith.constant 0 : index
    %c0_7 = arith.constant 0 : index
    %8 = vector.load %arg4[%c0_6, %c0_7] : memref<384x16xf32, #tpu.memory_space<vmem>>, vector<384x16xf32>
    tpu.vector_store %arg4[%c0_6, %c0_7], %7 {strides = array<i32>} : memref<384x16xf32, #tpu.memory_space<vmem>>, vector<384x16xf32>,
    return
  }
  func.func @transform_0(%arg0: i32) -> (i32, i32) {
    %c0_i32 = arith.constant 0 : i32
    %c0_i32_0 = arith.constant 0 : i32
    return %arg0, %c0_i32 : i32, i32
  }
  func.func @transform_1(%arg0: i32) -> (i32, i32) {
    %c0_i32 = arith.constant 0 : i32
    %c0_i32_0 = arith.constant 0 : i32
    %c0_i32_1 = arith.constant 0 : i32
    return %c0_i32, %c0_i32_0 : i32, i32
  }
  func.func @transform_2(%arg0: i32) -> (i32, i32) {
    %c0_i32 = arith.constant 0 : i32
    %c0_i32_0 = arith.constant 0 : i32
    %c0_i32_1 = arith.constant 0 : i32
    return %c0_i32, %c0_i32_0 : i32, i32
  }
  func.func @transform_3(%arg0: i32) -> (i32, i32) {
    %c0_i32 = arith.constant 0 : i32
    %c0_i32_0 = arith.constant 0 : i32
    return %arg0, %c0_i32 : i32, i32
  }
}

</mosaic_0001>

<bundles_post_ra>
// kernel: tpu_custom_call.1
= control target key start
LH: loop header
LB: loop body
LE: loop exit
PB: predicated region body
PF: predicated region fallthrough
CT: control target
= control target key end

     0   :  { %vm278_vm0 = vcmask 1044480   ;;  %vm279_vm1 = vcmask 1045504   ;;  %vm205_vm2 = vcmask 220160   ;;  %v771_v1 = vmov 65535   ;;  %s1139_s1 = inlined_call_operand.vmem [shape: bf16[27,16], index: 1, kind: input, shape index: {}]   ;;  %s1140_s0 = inlined_call_operand.vmem [shape: bf16[384,27], index: 0, kind: input, shape index: {}]   ;;  %s1141_s2 = inlined_call_operand.vmem [shape: f32[1,16], index: 2, kind: input, shape index: {}]   ;;  %s1142_s3 = inlined_call_operand.vmem [shape: f32[384,16], index: 3, kind: output, shape index: {}]  }
   0x1   :  { %v745_v0 = vld [vmem:[%s1139_s1] sm:$0xff]   ;;  %v280_v2 = vsel %vm278_vm0, 4294967295, %v771_v1  ;;  %v746_v3 = vld [vmem:[%s1139_s1 + $0x8] sm:$0x3f]   ;;  %v751_v10 = vld [vmem:[%s1140_s0 + $0x10] sm:$0xff]   ;;  %vm558_vm3 = vcmask 130048  }
   0x2   :  { %688 = vmatprep.subr.bf16.mxu0 %v745_v0  ;;  %740 = vmatprep.subr.bf16.mxu1 %v745_v0  ;;  %v281_v4 = vsel %vm279_vm1, %v280_v2, 0  ;;  %v747_v5 = vld [vmem:[%s1140_s0] sm:$0xff]   ;;  %v749_v8 = vld [vmem:[%s1140_s0 + $0x8] sm:$0xff]   ;;  %v752_v11 = vld [vmem:[%s1140_s0 + $0x70] sm:$0xff]  }
   0x3   :  { %689 = vmatpush3.bf16.msra.mxu0 %v745_v0  ;;  %742 = vmatpush3.bf16.msra.mxu1 %v745_v0  ;;  %v283_v6 = vand.u32 %v746_v3, %v281_v4  ;;  %v748_v7 = vld [vmem:[%s1140_s0 + $0x60] sm:$0xff]   ;;  %v750_v9 = vld [vmem:[%s1140_s0 + $0x68] sm:$0xff]   ;;  %v753_v12 = vld [vmem:[%s1140_s0 + $0x18] sm:$0xff]  }
   0x4   :  { %692 = vmatprep.mubr.msk.bf16.mxu0 %vm205_vm2, %v747_v5  ;;  %716 = vmatprep.mubr.msk.bf16.mxu1 %vm205_vm2, %v748_v7  ;;  %v754_v13 = vld [vmem:[%s1140_s0 + $0x78] sm:$0xff]   ;;  %v755_v14 = vld [vmem:[%s1140_s0 + $0x20] sm:$0xff]   ;;  %v757_v16 = vld [vmem:[%s1140_s0 + $0x28] sm:$0xff]  }
   0x5   :  { %690 = vmatprep.subr.bf16.mxu0 %v283_v6  ;;  %741 = vmatprep.subr.bf16.mxu1 %v283_v6  ;;  %v756_v15 = vld [vmem:[%s1140_s0 + $0x80] sm:$0xff]   ;;  %v758_v17 = vld [vmem:[%s1140_s0 + $0x88] sm:$0xff]   ;;  %v759_v18 = vld [vmem:[%s1140_s0 + $0x30] sm:$0xff]  }
   0x6   :  { %v760_v19 = vld [vmem:[%s1140_s0 + $0x90] sm:$0xff]   ;;  %v761_v20 = vld [vmem:[%s1140_s0 + $0x38] sm:$0xff]   ;;  %v763_v22 = vld [vmem:[%s1140_s0 + $0x40] sm:$0xff]  }
   0x7   :  { %691 = vmatpush3.bf16.msra.mxu0 %v283_v6  ;;  %743 = vmatpush3.bf16.msra.mxu1 %v283_v6  ;;  %v762_v21 = vld [vmem:[%s1140_s0 + $0x98] sm:$0xff]   ;;  %v764_v23 = vld [vmem:[%s1140_s0 + $0xa0] sm:$0xff]   ;;  %v765_v24 = vld [vmem:[%s1140_s0 + $0x48] sm:$0xff]  }
   0x8   :  { %v766_v25 = vld [vmem:[%s1140_s0 + $0xa8] sm:$0xff]   ;;  %v767_v26 = vld [vmem:[%s1140_s0 + $0x50] sm:$0xff]   ;;  %v769_v28 = vld [vmem:[%s1140_s0 + $0x58] sm:$0xff]  }
   0x9   :  { %v768_v27 = vld [vmem:[%s1140_s0 + $0xb0] sm:$0xff]   ;;  %v770_v29 = vld [vmem:[%s1140_s0 + $0xb8] sm:$0xff]   ;;  %v897_v30 = vld [vmem:[%s1141_s2] ss:$0 sm:$0xff] }
   0xa   :  { %693 = vmatmul.mubr.msk.bf16.vlgmr.msra.gmra.mrb[0].mxu0 %vm205_vm2, %v749_v8  ;;  %717 = vmatmul.mubr.msk.bf16.vlgmr.msra.gmra.mrb[0].mxu1 %vm205_vm2, %v750_v9 }
   0xb   :  { %696 = vmatprep.mubr.msk.bf16.mxu0 %vm205_vm2, %v751_v10  ;;  %720 = vmatprep.mubr.msk.bf16.mxu1 %vm205_vm2, %v752_v11 }
  0x12   :  { %697 = vmatmul.mubr.msk.bf16.gmra.mrb[4].mxu0 %vm205_vm2, %v753_v12  ;;  %721 = vmatmul.mubr.msk.bf16.gmra.mrb[4].mxu1 %vm205_vm2, %v754_v13 }
  0x13   :  { %700 = vmatprep.mubr.msk.bf16.mxu0 %vm205_vm2, %v755_v14  ;;  %724 = vmatprep.mubr.msk.bf16.mxu1 %vm205_vm2, %v756_v15 }
  0x1a   :  { %701 = vmatmul.mubr.msk.bf16.gmra.mrb[8].mxu0 %vm205_vm2, %v757_v16  ;;  %725 = vmatmul.mubr.msk.bf16.gmra.mrb[8].mxu1 %vm205_vm2, %v758_v17 }
  0x1b   :  { %704 = vmatprep.mubr.msk.bf16.mxu0 %vm205_vm2, %v759_v18  ;;  %728 = vmatprep.mubr.msk.bf16.mxu1 %vm205_vm2, %v760_v19 }
  0x22   :  { %705 = vmatmul.mubr.msk.bf16.gmra.mrb[12].mxu0 %vm205_vm2, %v761_v20  ;;  %729 = vmatmul.mubr.msk.bf16.gmra.mrb[12].mxu1 %vm205_vm2, %v762_v21 }
  0x23   :  { %708 = vmatprep.mubr.msk.bf16.mxu0 %vm205_vm2, %v763_v22  ;;  %732 = vmatprep.mubr.msk.bf16.mxu1 %vm205_vm2, %v764_v23 }
  0x2a   :  { %709 = vmatmul.mubr.msk.bf16.gmra.mrb[16].mxu0 %vm205_vm2, %v765_v24  ;;  %733 = vmatmul.mubr.msk.bf16.gmra.mrb[16].mxu1 %vm205_vm2, %v766_v25 }
  0x2b   :  { %712 = vmatprep.mubr.msk.bf16.mxu0 %vm205_vm2, %v767_v26  ;;  %736 = vmatprep.mubr.msk.bf16.mxu1 %vm205_vm2, %v768_v27 }
  0x32   :  { %713 = vmatmul.mubr.msk.bf16.gmra.mrb[20].mxu0 %vm205_vm2, %v769_v28  ;;  %737 = vmatmul.mubr.msk.bf16.gmra.mrb[20].mxu1 %vm205_vm2, %v770_v29 }
  0xdd   :  { %v694_v31 = vpop.f32.mrb[0].mxu0  ;;  %v718_v32 = vpop.f32.mrb[0].mxu1 }
  0xde   :  { %v328_v33 = vadd.f32 %v694_v31, %v897_v30  ;;  %v424_v34 = vadd.f32 %v718_v32, %v897_v30  ;;  %v319_v35 = vpop.f32.mrb[1].mxu0  ;;  %v415_v36 = vpop.f32.mrb[1].mxu1 }
  0xdf   :  { %v320_v37 = vadd.f32 %v897_v30, %v319_v35  ;;  %v416_v38 = vadd.f32 %v897_v30, %v415_v36  ;;  %v695_v39 = vpop.f32.mrb[2].mxu0  ;;  %v719_v40 = vpop.f32.mrb[2].mxu1 }
  0xe0   :  { %v512_v41 = vmax.f32 %v328_v33, 0.0  ;;  %v536_v42 = vmax.f32 %v424_v34, 0.0  ;;  %v331_v43 = vadd.f32 %v695_v39, %v897_v30  ;;  %v427_v44 = vadd.f32 %v719_v40, %v897_v30  ;;  %v322_v45 = vpop.f32.mrb[3].mxu0  ;;  %v418_v46 = vpop.f32.mrb[3].mxu1 }
  0xe1   :  { %v510_v47 = vmax.f32 %v320_v37, 0.0  ;;  %v534_v48 = vmax.f32 %v416_v38, 0.0  ;;  %v323_v49 = vadd.f32 %v897_v30, %v322_v45  ;;  %v419_v50 = vadd.f32 %v897_v30, %v418_v46 }
  0xe2   :  { %561 = vst.msk [vmem:[%s1142_s3 + $0x10] sm:$0xff] %vm558_vm3, %v512_v41  ;;  %585 = vst.msk [vmem:[%s1142_s3 + $0xd0] sm:$0xff] %vm558_vm3, %v536_v42  ;;  %v513_v51 = vmax.f32 %v331_v43, 0.0  ;;  %v537_v52 = vmax.f32 %v427_v44, 0.0 }
  0xe3   :  { %559 = vst.msk [vmem:[%s1142_s3] sm:$0xff] %vm558_vm3, %v510_v47  ;;  %583 = vst.msk [vmem:[%s1142_s3 + $0xc0] sm:$0xff] %vm558_vm3, %v534_v48  ;;  %v511_v53 = vmax.f32 %v323_v49, 0.0  ;;  %v535_v54 = vmax.f32 %v419_v50, 0.0 }
  0xe4   :  { %562 = vst.msk [vmem:[%s1142_s3 + $0x18] sm:$0xff] %vm558_vm3, %v513_v51  ;;  %586 = vst.msk [vmem:[%s1142_s3 + $0xd8] sm:$0xff] %vm558_vm3, %v537_v52 }
  0xe5   :  { %560 = vst.msk [vmem:[%s1142_s3 + $0x8] sm:$0xff] %vm558_vm3, %v511_v53  ;;  %584 = vst.msk [vmem:[%s1142_s3 + $0xc8] sm:$0xff] %vm558_vm3, %v535_v54  ;;  %v698_v55 = vpop.f32.mrb[4].mxu0  ;;  %v722_v56 = vpop.f32.mrb[4].mxu1 }
  0xe6   :  { %v344_v57 = vadd.f32 %v698_v55, %v897_v30  ;;  %v440_v58 = vadd.f32 %v722_v56, %v897_v30  ;;  %v335_v59 = vpop.f32.mrb[5].mxu0  ;;  %v431_v60 = vpop.f32.mrb[5].mxu1 }
  0xe7   :  { %v336_v61 = vadd.f32 %v897_v30, %v335_v59  ;;  %v432_v62 = vadd.f32 %v897_v30, %v431_v60  ;;  %v699_v63 = vpop.f32.mrb[6].mxu0  ;;  %v723_v0 = vpop.f32.mrb[6].mxu1 }
  0xe8   :  { %v516_v1 = vmax.f32 %v344_v57, 0.0  ;;  %v540_v2 = vmax.f32 %v440_v58, 0.0  ;;  %v347_v3 = vadd.f32 %v699_v63, %v897_v30  ;;  %v443_v4 = vadd.f32 %v723_v0, %v897_v30  ;;  %v338_v5 = vpop.f32.mrb[7].mxu0  ;;  %v434_v6 = vpop.f32.mrb[7].mxu1 }
  0xe9   :  { %v514_v7 = vmax.f32 %v336_v61, 0.0  ;;  %v538_v8 = vmax.f32 %v432_v62, 0.0  ;;  %v339_v9 = vadd.f32 %v897_v30, %v338_v5  ;;  %v435_v10 = vadd.f32 %v897_v30, %v434_v6 }
  0xea   :  { %565 = vst.msk [vmem:[%s1142_s3 + $0x30] sm:$0xff] %vm558_vm3, %v516_v1  ;;  %589 = vst.msk [vmem:[%s1142_s3 + $0xf0] sm:$0xff] %vm558_vm3, %v540_v2  ;;  %v517_v11 = vmax.f32 %v347_v3, 0.0  ;;  %v541_v12 = vmax.f32 %v443_v4, 0.0 }
  0xeb   :  { %563 = vst.msk [vmem:[%s1142_s3 + $0x20] sm:$0xff] %vm558_vm3, %v514_v7  ;;  %587 = vst.msk [vmem:[%s1142_s3 + $0xe0] sm:$0xff] %vm558_vm3, %v538_v8  ;;  %v515_v13 = vmax.f32 %v339_v9, 0.0  ;;  %v539_v14 = vmax.f32 %v435_v10, 0.0 }
  0xec   :  { %566 = vst.msk [vmem:[%s1142_s3 + $0x38] sm:$0xff] %vm558_vm3, %v517_v11  ;;  %590 = vst.msk [vmem:[%s1142_s3 + $0xf8] sm:$0xff] %vm558_vm3, %v541_v12 }
  0xed   :  { %564 = vst.msk [vmem:[%s1142_s3 + $0x28] sm:$0xff] %vm558_vm3, %v515_v13  ;;  %588 = vst.msk [vmem:[%s1142_s3 + $0xe8] sm:$0xff] %vm558_vm3, %v539_v14  ;;  %v702_v15 = vpop.f32.mrb[8].mxu0  ;;  %v726_v16 = vpop.f32.mrb[8].mxu1 }
  0xee   :  { %v360_v17 = vadd.f32 %v702_v15, %v897_v30  ;;  %v456_v18 = vadd.f32 %v726_v16, %v897_v30  ;;  %v351_v19 = vpop.f32.mrb[9].mxu0  ;;  %v447_v20 = vpop.f32.mrb[9].mxu1 }
  0xef   :  { %v352_v21 = vadd.f32 %v897_v30, %v351_v19  ;;  %v448_v22 = vadd.f32 %v897_v30, %v447_v20  ;;  %v703_v23 = vpop.f32.mrb[10].mxu0  ;;  %v727_v24 = vpop.f32.mrb[10].mxu1 }
  0xf0   :  { %v520_v25 = vmax.f32 %v360_v17, 0.0  ;;  %v544_v26 = vmax.f32 %v456_v18, 0.0  ;;  %v363_v27 = vadd.f32 %v703_v23, %v897_v30  ;;  %v459_v28 = vadd.f32 %v727_v24, %v897_v30  ;;  %v354_v29 = vpop.f32.mrb[11].mxu0  ;;  %v450_v31 = vpop.f32.mrb[11].mxu1 }
  0xf1   :  { %v518_v32 = vmax.f32 %v352_v21, 0.0  ;;  %v542_v33 = vmax.f32 %v448_v22, 0.0  ;;  %v355_v34 = vadd.f32 %v897_v30, %v354_v29  ;;  %v451_v35 = vadd.f32 %v897_v30, %v450_v31 }
  0xf2   :  { %569 = vst.msk [vmem:[%s1142_s3 + $0x50] sm:$0xff] %vm558_vm3, %v520_v25  ;;  %593 = vst.msk [vmem:[%s1142_s3 + $0x110] sm:$0xff] %vm558_vm3, %v544_v26  ;;  %v521_v36 = vmax.f32 %v363_v27, 0.0  ;;  %v545_v37 = vmax.f32 %v459_v28, 0.0 }
  0xf3   :  { %567 = vst.msk [vmem:[%s1142_s3 + $0x40] sm:$0xff] %vm558_vm3, %v518_v32  ;;  %591 = vst.msk [vmem:[%s1142_s3 + $0x100] sm:$0xff] %vm558_vm3, %v542_v33  ;;  %v519_v38 = vmax.f32 %v355_v34, 0.0  ;;  %v543_v39 = vmax.f32 %v451_v35, 0.0 }
  0xf4   :  { %570 = vst.msk [vmem:[%s1142_s3 + $0x58] sm:$0xff] %vm558_vm3, %v521_v36  ;;  %594 = vst.msk [vmem:[%s1142_s3 + $0x118] sm:$0xff] %vm558_vm3, %v545_v37 }
  0xf5   :  { %568 = vst.msk [vmem:[%s1142_s3 + $0x48] sm:$0xff] %vm558_vm3, %v519_v38  ;;  %592 = vst.msk [vmem:[%s1142_s3 + $0x108] sm:$0xff] %vm558_vm3, %v543_v39  ;;  %v706_v40 = vpop.f32.mrb[12].mxu0  ;;  %v730_v41 = vpop.f32.mrb[12].mxu1 }
  0xf6   :  { %v376_v42 = vadd.f32 %v706_v40, %v897_v30  ;;  %v472_v43 = vadd.f32 %v730_v41, %v897_v30  ;;  %v367_v44 = vpop.f32.mrb[13].mxu0  ;;  %v463_v45 = vpop.f32.mrb[13].mxu1 }
  0xf7   :  { %v368_v46 = vadd.f32 %v897_v30, %v367_v44  ;;  %v464_v47 = vadd.f32 %v897_v30, %v463_v45  ;;  %v707_v48 = vpop.f32.mrb[14].mxu0  ;;  %v731_v49 = vpop.f32.mrb[14].mxu1 }
  0xf8   :  { %v524_v50 = vmax.f32 %v376_v42, 0.0  ;;  %v548_v51 = vmax.f32 %v472_v43, 0.0  ;;  %v379_v52 = vadd.f32 %v707_v48, %v897_v30  ;;  %v475_v53 = vadd.f32 %v731_v49, %v897_v30  ;;  %v370_v54 = vpop.f32.mrb[15].mxu0  ;;  %v466_v55 = vpop.f32.mrb[15].mxu1 }
  0xf9   :  { %v522_v56 = vmax.f32 %v368_v46, 0.0  ;;  %v546_v57 = vmax.f32 %v464_v47, 0.0  ;;  %v371_v58 = vadd.f32 %v897_v30, %v370_v54  ;;  %v467_v59 = vadd.f32 %v897_v30, %v466_v55 }
  0xfa   :  { %573 = vst.msk [vmem:[%s1142_s3 + $0x70] sm:$0xff] %vm558_vm3, %v524_v50  ;;  %597 = vst.msk [vmem:[%s1142_s3 + $0x130] sm:$0xff] %vm558_vm3, %v548_v51  ;;  %v525_v60 = vmax.f32 %v379_v52, 0.0  ;;  %v549_v61 = vmax.f32 %v475_v53, 0.0 }
  0xfb   :  { %571 = vst.msk [vmem:[%s1142_s3 + $0x60] sm:$0xff] %vm558_vm3, %v522_v56  ;;  %595 = vst.msk [vmem:[%s1142_s3 + $0x120] sm:$0xff] %vm558_vm3, %v546_v57  ;;  %v523_v62 = vmax.f32 %v371_v58, 0.0  ;;  %v547_v63 = vmax.f32 %v467_v59, 0.0 }
  0xfc   :  { %574 = vst.msk [vmem:[%s1142_s3 + $0x78] sm:$0xff] %vm558_vm3, %v525_v60  ;;  %598 = vst.msk [vmem:[%s1142_s3 + $0x138] sm:$0xff] %vm558_vm3, %v549_v61 }
  0xfd   :  { %572 = vst.msk [vmem:[%s1142_s3 + $0x68] sm:$0xff] %vm558_vm3, %v523_v62  ;;  %596 = vst.msk [vmem:[%s1142_s3 + $0x128] sm:$0xff] %vm558_vm3, %v547_v63  ;;  %v710_v0 = vpop.f32.mrb[16].mxu0  ;;  %v734_v1 = vpop.f32.mrb[16].mxu1 }
  0xfe   :  { %v392_v2 = vadd.f32 %v710_v0, %v897_v30  ;;  %v488_v3 = vadd.f32 %v734_v1, %v897_v30  ;;  %v383_v4 = vpop.f32.mrb[17].mxu0  ;;  %v479_v5 = vpop.f32.mrb[17].mxu1 }
  0xff   :  { %v384_v6 = vadd.f32 %v897_v30, %v383_v4  ;;  %v480_v7 = vadd.f32 %v897_v30, %v479_v5  ;;  %v711_v8 = vpop.f32.mrb[18].mxu0  ;;  %v735_v9 = vpop.f32.mrb[18].mxu1 }
 0x100   :  { %v528_v10 = vmax.f32 %v392_v2, 0.0  ;;  %v552_v11 = vmax.f32 %v488_v3, 0.0  ;;  %v395_v12 = vadd.f32 %v711_v8, %v897_v30  ;;  %v491_v13 = vadd.f32 %v735_v9, %v897_v30  ;;  %v386_v14 = vpop.f32.mrb[19].mxu0  ;;  %v482_v15 = vpop.f32.mrb[19].mxu1 }
 0x101   :  { %v526_v16 = vmax.f32 %v384_v6, 0.0  ;;  %v550_v17 = vmax.f32 %v480_v7, 0.0  ;;  %v387_v18 = vadd.f32 %v897_v30, %v386_v14  ;;  %v483_v19 = vadd.f32 %v897_v30, %v482_v15 }
 0x102   :  { %577 = vst.msk [vmem:[%s1142_s3 + $0x90] sm:$0xff] %vm558_vm3, %v528_v10  ;;  %601 = vst.msk [vmem:[%s1142_s3 + $0x150] sm:$0xff] %vm558_vm3, %v552_v11  ;;  %v529_v20 = vmax.f32 %v395_v12, 0.0  ;;  %v553_v21 = vmax.f32 %v491_v13, 0.0 }
 0x103   :  { %575 = vst.msk [vmem:[%s1142_s3 + $0x80] sm:$0xff] %vm558_vm3, %v526_v16  ;;  %599 = vst.msk [vmem:[%s1142_s3 + $0x140] sm:$0xff] %vm558_vm3, %v550_v17  ;;  %v527_v22 = vmax.f32 %v387_v18, 0.0  ;;  %v551_v23 = vmax.f32 %v483_v19, 0.0 }
 0x104   :  { %578 = vst.msk [vmem:[%s1142_s3 + $0x98] sm:$0xff] %vm558_vm3, %v529_v20  ;;  %602 = vst.msk [vmem:[%s1142_s3 + $0x158] sm:$0xff] %vm558_vm3, %v553_v21 }
 0x105   :  { %576 = vst.msk [vmem:[%s1142_s3 + $0x88] sm:$0xff] %vm558_vm3, %v527_v22  ;;  %600 = vst.msk [vmem:[%s1142_s3 + $0x148] sm:$0xff] %vm558_vm3, %v551_v23  ;;  %v714_v24 = vpop.f32.mrb[20].mxu0  ;;  %v738_v25 = vpop.f32.mrb[20].mxu1 }
 0x106   :  { %v408_v26 = vadd.f32 %v714_v24, %v897_v30  ;;  %v504_v27 = vadd.f32 %v738_v25, %v897_v30  ;;  %v399_v28 = vpop.f32.mrb[21].mxu0  ;;  %v495_v29 = vpop.f32.mrb[21].mxu1 }
 0x107   :  { %v400_v31 = vadd.f32 %v897_v30, %v399_v28  ;;  %v496_v32 = vadd.f32 %v897_v30, %v495_v29  ;;  %v715_v33 = vpop.f32.mrb[22].mxu0  ;;  %v739_v34 = vpop.f32.mrb[22].mxu1 }
 0x108   :  { %v532_v35 = vmax.f32 %v408_v26, 0.0  ;;  %v556_v36 = vmax.f32 %v504_v27, 0.0  ;;  %v411_v37 = vadd.f32 %v715_v33, %v897_v30  ;;  %v507_v38 = vadd.f32 %v739_v34, %v897_v30  ;;  %v402_v39 = vpop.f32.mrb[23].mxu0  ;;  %v498_v40 = vpop.f32.mrb[23].mxu1 }
 0x109   :  { %v530_v41 = vmax.f32 %v400_v31, 0.0  ;;  %v554_v42 = vmax.f32 %v496_v32, 0.0  ;;  %v403_v43 = vadd.f32 %v897_v30, %v402_v39  ;;  %v499_v44 = vadd.f32 %v897_v30, %v498_v40 }
 0x10a   :  { %581 = vst.msk [vmem:[%s1142_s3 + $0xb0] sm:$0xff] %vm558_vm3, %v532_v35  ;;  %605 = vst.msk [vmem:[%s1142_s3 + $0x170] sm:$0xff] %vm558_vm3, %v556_v36  ;;  %v533_v45 = vmax.f32 %v411_v37, 0.0  ;;  %v557_v46 = vmax.f32 %v507_v38, 0.0 }
 0x10b   :  { %579 = vst.msk [vmem:[%s1142_s3 + $0xa0] sm:$0xff] %vm558_vm3, %v530_v41  ;;  %603 = vst.msk [vmem:[%s1142_s3 + $0x160] sm:$0xff] %vm558_vm3, %v554_v42  ;;  %v531_v30 = vmax.f32 %v403_v43, 0.0  ;;  %v555_v47 = vmax.f32 %v499_v44, 0.0 }
 0x10c   :  { %582 = vst.msk [vmem:[%s1142_s3 + $0xb8] sm:$0xff] %vm558_vm3, %v533_v45  ;;  %606 = vst.msk [vmem:[%s1142_s3 + $0x178] sm:$0xff] %vm558_vm3, %v557_v46 }
 0x10d   :  { %580 = vst.msk [vmem:[%s1142_s3 + $0xa8] sm:$0xff] %vm558_vm3, %v531_v30  ;;  %604 = vst.msk [vmem:[%s1142_s3 + $0x168] sm:$0xff] %vm558_vm3, %v555_v47 }

</bundles_post_ra>
